<compile_context>
chip_gen: v5e
topology: v5e:2x2
jax: 0.10.0
libtpu: 0.0.40
codegen_flags: <defaults>
</compile_context>

<pallas_src>
import functools

import jax
import jax.numpy as jnp
from jax.experimental import pallas as pl
from jax.experimental.pallas import tpu as pltpu


def _round_up(x, m):
    return ((x + m - 1) // m) * m


def _layernorm_fp32(x, gamma, beta, eps):
    # x: (tm, F) float32; gamma/beta: (1, F) float32
    mean = jnp.mean(x, axis=-1, keepdims=True)
    xc = x - mean
    var = jnp.mean(xc * xc, axis=-1, keepdims=True)
    inv = jax.lax.rsqrt(var + eps)
    return xc * inv * gamma + beta


def cross_output_kernel(
    h_ref,      # (tm, D)   hidden_states tile (bf16)
    inp_ref,    # (tm, D)   input_tensor tile (residual)
    wout_ref,   # (D, D)    out_proj weight (in, out), bf16
    bout_ref,   # (1, D)
    g2_ref,     # (1, D)    norm2 gamma
    bn2_ref,    # (1, D)    norm2 beta
    w13_ref,    # (D, 2I)   fused [w1 | w3] weight (in, out), bf16
    b13_ref,    # (1, 2I)   fused [b1 | b3]
    gffn_ref,   # (1, I)    ffn_ln gamma
    bffn_ref,   # (1, I)    ffn_ln beta
    w2_ref,     # (I, D)    w2 weight (in, out), bf16
    b2_ref,     # (1, D)
    out_ref,    # (tm, D)
    *,
    inter_size,
    norm2_eps,
    ffn_ln_eps,
):
    # ---- residual 1: x = input + out_proj(hidden) --------------------------
    proj = jnp.dot(h_ref[...], wout_ref[...], preferred_element_type=jnp.float32)
    x = inp_ref[...].astype(jnp.float32) + proj + bout_ref[...].astype(jnp.float32)

    # ---- norm2 (LayerNormFp32, eps=1e-5), fp32 math -------------------------
    ln2 = _layernorm_fp32(
        x, g2_ref[...].astype(jnp.float32), bn2_ref[...].astype(jnp.float32),
        norm2_eps)

    # ---- gated MLP: SiLU(w1 x) * (w3 x) with one fused (D, 2I) MXU pass -----
    h13 = (jnp.dot(ln2.astype(jnp.bfloat16), w13_ref[...],
                   preferred_element_type=jnp.float32)
           + b13_ref[...].astype(jnp.float32))
    h1 = h13[:, :inter_size]
    h3 = h13[:, inter_size:]
    g = (h1 * jax.nn.sigmoid(h1)) * h3            # SiLU(h1) * h3

    # ---- ffn_ln (LayerNormFp32, eps=config.layer_norm_eps), fp32 math -------
    gn = _layernorm_fp32(
        g, gffn_ref[...].astype(jnp.float32), bffn_ref[...].astype(jnp.float32),
        ffn_ln_eps)

    # ---- w2 projection + residual 2 -----------------------------------------
    mlp_out = (jnp.dot(gn.astype(jnp.bfloat16), w2_ref[...],
                       preferred_element_type=jnp.float32)
               + b2_ref[...].astype(jnp.float32))
    out_ref[...] = (x + mlp_out).astype(out_ref.dtype)


def cross_output_forward(hidden_states, input_tensor, params,
                         *, norm2_eps=1e-5, ffn_ln_eps=1e-6, tm=512):
    """hidden_states, input_tensor: (B, S, D). Returns (B, S, D)."""
    B, S, D = hidden_states.shape
    M = B * S
    I = params["w1"].shape[1]

    # Row tile: as large as requested, multiple of 8, capped at (padded) M.
    tm_eff = min(tm, _round_up(M, 8))
    M_pad = _round_up(M, tm_eff)

    # hidden_states only feeds the MXU -> pre-cast to bf16 (halves HBM traffic,
    # removes an in-kernel cast). Residual stays in its original dtype.
    h2d = hidden_states.reshape(M, D).astype(jnp.bfloat16)
    x2d = input_tensor.reshape(M, D)
    if M_pad != M:
        pad = ((0, M_pad - M), (0, 0))
        h2d = jnp.pad(h2d, pad)
        x2d = jnp.pad(x2d, pad)

    # Weights: pre-transposed (in, out); bf16 for the MXU and to halve HBM
    # traffic / VMEM residency. w1 and w3 are fused along the output dim.
    wout = params["wout"].astype(jnp.bfloat16)
    w13 = jnp.concatenate([params["w1"], params["w3"]], axis=1).astype(jnp.bfloat16)
    b13 = jnp.concatenate([params["b1"], params["b3"]], axis=1)
    w2 = params["w2"].astype(jnp.bfloat16)

    row_spec = pl.BlockSpec((tm_eff, D), lambda i: (i, 0))

    def const_spec(shape):
        # Grid-invariant weight / bias / LN-param blocks: a second pipeline
        # buffer is pure VMEM waste -> single-buffer them.
        return pl.BlockSpec(shape, lambda i: (0, 0), pipeline_mode=pl.Buffered(1))

    grid = (M_pad // tm_eff,)

    flops = int(2 * M_pad * (D * D + D * (2 * I) + I * D))
    bytes_accessed = int(
        M_pad * D * 2                                 # hidden (bf16)
        + M_pad * D * input_tensor.dtype.itemsize     # residual input
        + M_pad * D * input_tensor.dtype.itemsize     # output
        + (D * D + D * 2 * I + I * D) * 2             # bf16 weights
        + (6 * D + 4 * I) * 4                         # biases / LN params
    )

    kernel = functools.partial(cross_output_kernel, inter_size=I,
                               norm2_eps=norm2_eps, ffn_ln_eps=ffn_ln_eps)

    out = pl.pallas_call(
        kernel,
        out_shape=jax.ShapeDtypeStruct((M_pad, D), input_tensor.dtype),
        grid_spec=pl.GridSpec(
            grid=grid,
            in_specs=[
                row_spec,                     # hidden (bf16)
                row_spec,                     # input (residual)
                const_spec((D, D)),           # wout
                const_spec((1, D)),           # bout
                const_spec((1, D)),           # norm2 gamma
                const_spec((1, D)),           # norm2 beta
                const_spec((D, 2 * I)),       # fused w1|w3
                const_spec((1, 2 * I)),       # fused b1|b3
                const_spec((1, I)),           # ffn_ln gamma
                const_spec((1, I)),           # ffn_ln beta
                const_spec((I, D)),           # w2
                const_spec((1, D)),           # b2
            ],
            out_specs=row_spec,
        ),
        compiler_params=pltpu.CompilerParams(
            dimension_semantics=("parallel",),
            vmem_limit_bytes=64 * 1024 * 1024,
        ),
        cost_estimate=pl.CostEstimate(
            flops=flops,
            transcendentals=int(M_pad * I),      # sigmoid in SiLU
            bytes_accessed=bytes_accessed,
        ),
    )(
        h2d, x2d,
        wout, params["bout"],
        params["g2"], params["bn2"],
        w13, b13,
        params["gffn"], params["bffn"],
        w2, params["b2"],
    )
    # TODO(synk): if production hidden_size D < 128, fold row tiles into a
    # lane-dense output slab in the wrapper to avoid masked partial stores.
    return out[:M].reshape(B, S, D)


def make_params(key, D, I, dtype=jnp.float32):
    ks = jax.random.split(key, 8)
    scale_d = 1.0 / jnp.sqrt(D)
    scale_i = 1.0 / jnp.sqrt(I)
    # Linear weights stored pre-transposed: (in_features, out_features)
    return {
        "wout": jax.random.normal(ks[0], (D, D), dtype) * scale_d,
        "bout": jax.random.normal(ks[1], (1, D), dtype) * 0.02,
        "g2":   jnp.ones((1, D), dtype),
        "bn2":  jnp.zeros((1, D), dtype),
        "w1":   jax.random.normal(ks[2], (D, I), dtype) * scale_d,
        "b1":   jax.random.normal(ks[3], (1, I), dtype) * 0.02,
        "w3":   jax.random.normal(ks[4], (D, I), dtype) * scale_d,
        "b3":   jax.random.normal(ks[5], (1, I), dtype) * 0.02,
        "gffn": jnp.ones((1, I), dtype),
        "bffn": jnp.zeros((1, I), dtype),
        "w2":   jax.random.normal(ks[6], (I, D), dtype) * scale_i,
        "b2":   jax.random.normal(ks[7], (1, D), dtype) * 0.02,
    }


def ref_forward(hidden_states, input_tensor, p, norm2_eps=1e-5, ffn_ln_eps=1e-6):
    """Reference matching the kernel's numerics (bf16 matmul operands, fp32 acc)."""
    def ln(x, g, b, eps):
        m = jnp.mean(x, -1, keepdims=True)
        v = jnp.mean((x - m) ** 2, -1, keepdims=True)
        return (x - m) * jax.lax.rsqrt(v + eps) * g + b

    def mm(a, w):
        return jnp.dot(a.astype(jnp.bfloat16), w.astype(jnp.bfloat16),
                       preferred_element_type=jnp.float32)

    x = input_tensor + mm(hidden_states, p["wout"]) + p["bout"]
    l2 = ln(x, p["g2"], p["bn2"], norm2_eps)
    h1 = mm(l2, p["w1"]) + p["b1"]
    h3 = mm(l2, p["w3"]) + p["b3"]
    g = jax.nn.silu(h1) * h3
    gn = ln(g, p["gffn"], p["bffn"], ffn_ln_eps)
    return x + mm(gn, p["w2"]) + p["b2"]


if __name__ == "__main__":
    # Small config: hidden_size=32, intermediate_size=64, batch=2, seq=8
    B, S, D, I = 2, 8, 32, 64
    key = jax.random.PRNGKey(0)
    k1, k2, k3 = jax.random.split(key, 3)

    hidden_states = jax.random.normal(k1, (B, S, D), jnp.float32)
    input_tensor = jax.random.normal(k2, (B, S, D), jnp.float32)
    params = make_params(k3, D, I)

    out = cross_output_forward(hidden_states, input_tensor, params)
    out = jax.block_until_ready(out)

    ref = ref_forward(hidden_states, input_tensor, params)
    assert out.shape == (B, S, D)
    max_err = float(jnp.max(jnp.abs(out - ref)))
    assert jnp.allclose(out, ref, atol=1e-2, rtol=1e-2), max_err

    print("KERNEL_OK")
</pallas_src>

<mosaic_0001>
module attributes {stable_mosaic.version = 11 : i64} {
  func.func @cross_output_kernel(%arg0: i32, %arg1: memref<16x32xbf16, #tpu.memory_space<vmem>>, %arg2: memref<16x32xf32, #tpu.memory_space<vmem>>, %arg3: memref<32x32xbf16, #tpu.memory_space<vmem>>, %arg4: memref<1x32xf32, #tpu.memory_space<vmem>>, %arg5: memref<1x32xf32, #tpu.memory_space<vmem>>, %arg6: memref<1x32xf32, #tpu.memory_space<vmem>>, %arg7: memref<32x128xbf16, #tpu.memory_space<vmem>>, %arg8: memref<1x128xf32, #tpu.memory_space<vmem>>, %arg9: memref<1x64xf32, #tpu.memory_space<vmem>>, %arg10: memref<1x64xf32, #tpu.memory_space<vmem>>, %arg11: memref<64x32xbf16, #tpu.memory_space<vmem>>, %arg12: memref<1x32xf32, #tpu.memory_space<vmem>>, %arg13: memref<16x32xf32, #tpu.memory_space<vmem>>) attributes {dimension_semantics = [#tpu.dimension_semantics<parallel>], iteration_bounds = array<i64: 1>, scalar_prefetch = 0 : i64, scratch_operands = 0 : i64, tpu.core_type = #tpu.core_type<tc>, window_params = [{transform_indices = @transform_0, window_bounds = array<i64: 16, 32>}, {transform_indices = @transform_1, window_bounds = array<i64: 16, 32>}, {pipeline_mode = #tpu.pipeline_mode<synchronous>, transform_indices = @transform_2, window_bounds = array<i64: 32, 32>}, {pipeline_mode = #tpu.pipeline_mode<synchronous>, transform_indices = @transform_3, window_bounds = array<i64: 1, 32>}, {pipeline_mode = #tpu.pipeline_mode<synchronous>, transform_indices = @transform_4, window_bounds = array<i64: 1, 32>}, {pipeline_mode = #tpu.pipeline_mode<synchronous>, transform_indices = @transform_5, window_bounds = array<i64: 1, 32>}, {pipeline_mode = #tpu.pipeline_mode<synchronous>, transform_indices = @transform_6, window_bounds = array<i64: 32, 128>}, {pipeline_mode = #tpu.pipeline_mode<synchronous>, transform_indices = @transform_7, window_bounds = array<i64: 1, 128>}, {pipeline_mode = #tpu.pipeline_mode<synchronous>, transform_indices = @transform_8, window_bounds = array<i64: 1, 64>}, {pipeline_mode = #tpu.pipeline_mode<synchronous>, transform_indices = @transform_9, window_bounds = array<i64: 1, 64>}, {pipeline_mode = #tpu.pipeline_mode<synchronous>, transform_indices = @transform_10, window_bounds = array<i64: 64, 32>}, {pipeline_mode = #tpu.pipeline_mode<synchronous>, transform_indices = @transform_11, window_bounds = array<i64: 1, 32>}, {transform_indices = @transform_12, window_bounds = array<i64: 16, 32>}]} {
    %c0 = arith.constant 0 : index
    %c0_0 = arith.constant 0 : index
    %0 = vector.load %arg1[%c0, %c0_0] : memref<16x32xbf16, #tpu.memory_space<vmem>>, vector<16x32xbf16>
    %c0_1 = arith.constant 0 : index
    %c0_2 = arith.constant 0 : index
    %1 = vector.load %arg3[%c0_1, %c0_2] : memref<32x32xbf16, #tpu.memory_space<vmem>>, vector<32x32xbf16>
    %cst = arith.constant dense<0.000000e+00> : vector<16x32xf32>
    %2 = tpu.matmul %0, %1, %cst {dimension_numbers = #tpu.dot_dimension_numbers<[1], [0], [0], [1], [0, 0, 1, 1], [], []>} : vector<16x32xbf16>, vector<32x32xbf16>, vector<16x32xf32> -> vector<16x32xf32>
    %c0_3 = arith.constant 0 : index
    %c0_4 = arith.constant 0 : index
    %3 = vector.load %arg2[%c0_3, %c0_4] : memref<16x32xf32, #tpu.memory_space<vmem>>, vector<16x32xf32>
    %4 = arith.addf %3, %2 : vector<16x32xf32>
    %c0_5 = arith.constant 0 : index
    %c0_6 = arith.constant 0 : index
    %5 = vector.load %arg4[%c0_5, %c0_6] : memref<1x32xf32, #tpu.memory_space<vmem>>, vector<1x32xf32>
    %6 = vector.broadcast %5 : vector<1x32xf32> to vector<16x32xf32>
    %7 = arith.addf %4, %6 : vector<16x32xf32>
    %c0_7 = arith.constant 0 : index
    %c0_8 = arith.constant 0 : index
    %8 = vector.load %arg5[%c0_7, %c0_8] : memref<1x32xf32, #tpu.memory_space<vmem>>, vector<1x32xf32>
    %c0_9 = arith.constant 0 : index
    %c0_10 = arith.constant 0 : index
    %9 = vector.load %arg6[%c0_9, %c0_10] : memref<1x32xf32, #tpu.memory_space<vmem>>, vector<1x32xf32>
    %cst_11 = arith.constant dense<0.000000e+00> : vector<16xf32>
    %10 = vector.multi_reduction <add>, %7, %cst_11 [1] : vector<16x32xf32> to vector<16xf32>
    %11 = vector.shape_cast %10 : vector<16xf32> to vector<16x1xf32>
    %cst_12 = arith.constant 3.200000e+01 : f32
    %12 = vector.broadcast %cst_12 : f32 to vector<16x1xf32>
    %13 = arith.divf %11, %12 : vector<16x1xf32>
    %14 = vector.broadcast %13 : vector<16x1xf32> to vector<16x32xf32>
    %15 = arith.subf %7, %14 : vector<16x32xf32>
    %16 = arith.mulf %15, %15 : vector<16x32xf32>
    %cst_13 = arith.constant dense<0.000000e+00> : vector<16xf32>
    %17 = vector.multi_reduction <add>, %16, %cst_13 [1] : vector<16x32xf32> to vector<16xf32>
    %18 = vector.shape_cast %17 : vector<16xf32> to vector<16x1xf32>
    %cst_14 = arith.constant 3.200000e+01 : f32
    %19 = vector.broadcast %cst_14 : f32 to vector<16x1xf32>
    %20 = arith.divf %18, %19 : vector<16x1xf32>
    %cst_15 = arith.constant 9.99999974E-6 : f32
    %21 = vector.broadcast %cst_15 : f32 to vector<16x1xf32>
    %22 = arith.addf %20, %21 : vector<16x1xf32>
    %23 = math.rsqrt %22 : vector<16x1xf32>
    %24 = vector.broadcast %23 : vector<16x1xf32> to vector<16x32xf32>
    %25 = arith.mulf %15, %24 : vector<16x32xf32>
    %26 = vector.broadcast %8 : vector<1x32xf32> to vector<16x32xf32>
    %27 = arith.mulf %25, %26 : vector<16x32xf32>
    %28 = vector.broadcast %9 : vector<1x32xf32> to vector<16x32xf32>
    %29 = arith.addf %27, %28 : vector<16x32xf32>
    %30 = arith.truncf %29 : vector<16x32xf32> to vector<16x32xbf16>
    %c0_16 = arith.constant 0 : index
    %c0_17 = arith.constant 0 : index
    %31 = vector.load %arg7[%c0_16, %c0_17] : memref<32x128xbf16, #tpu.memory_space<vmem>>, vector<32x128xbf16>
    %cst_18 = arith.constant dense<0.000000e+00> : vector<16x128xf32>
    %32 = tpu.matmul %30, %31, %cst_18 {dimension_numbers = #tpu.dot_dimension_numbers<[1], [0], [0], [1], [0, 0, 1, 1], [], []>} : vector<16x32xbf16>, vector<32x128xbf16>, vector<16x128xf32> -> vector<16x128xf32>
    %c0_19 = arith.constant 0 : index
    %c0_20 = arith.constant 0 : index
    %33 = vector.load %arg8[%c0_19, %c0_20] : memref<1x128xf32, #tpu.memory_space<vmem>>, vector<1x128xf32>
    %34 = vector.broadcast %33 : vector<1x128xf32> to vector<16x128xf32>
    %35 = arith.addf %32, %34 : vector<16x128xf32>
    %36 = vector.extract_strided_slice %35 {offsets = [0, 0], sizes = [16, 64], strides = [1, 1]} : vector<16x128xf32> to vector<16x64xf32>
    %37 = vector.extract_strided_slice %35 {offsets = [0, 64], sizes = [16, 64], strides = [1, 1]} : vector<16x128xf32> to vector<16x64xf32>
    %38 = arith.negf %36 : vector<16x64xf32>
    %39 = math.exp %38 : vector<16x64xf32>
    %cst_21 = arith.constant 1.000000e+00 : f32
    %40 = vector.broadcast %cst_21 : f32 to vector<16x64xf32>
    %41 = arith.addf %40, %39 : vector<16x64xf32>
    %42 = arith.divf %40, %41 : vector<16x64xf32>
    %43 = arith.mulf %36, %42 : vector<16x64xf32>
    %44 = arith.mulf %43, %37 : vector<16x64xf32>
    %c0_22 = arith.constant 0 : index
    %c0_23 = arith.constant 0 : index
    %45 = vector.load %arg9[%c0_22, %c0_23] : memref<1x64xf32, #tpu.memory_space<vmem>>, vector<1x64xf32>
    %c0_24 = arith.constant 0 : index
    %c0_25 = arith.constant 0 : index
    %46 = vector.load %arg10[%c0_24, %c0_25] : memref<1x64xf32, #tpu.memory_space<vmem>>, vector<1x64xf32>
    %cst_26 = arith.constant dense<0.000000e+00> : vector<16xf32>
    %47 = vector.multi_reduction <add>, %44, %cst_26 [1] : vector<16x64xf32> to vector<16xf32>
    %48 = vector.shape_cast %47 : vector<16xf32> to vector<16x1xf32>
    %cst_27 = arith.constant 6.400000e+01 : f32
    %49 = vector.broadcast %cst_27 : f32 to vector<16x1xf32>
    %50 = arith.divf %48, %49 : vector<16x1xf32>
    %51 = vector.broadcast %50 : vector<16x1xf32> to vector<16x64xf32>
    %52 = arith.subf %44, %51 : vector<16x64xf32>
    %53 = arith.mulf %52, %52 : vector<16x64xf32>
    %cst_28 = arith.constant dense<0.000000e+00> : vector<16xf32>
    %54 = vector.multi_reduction <add>, %53, %cst_28 [1] : vector<16x64xf32> to vector<16xf32>
    %55 = vector.shape_cast %54 : vector<16xf32> to vector<16x1xf32>
    %cst_29 = arith.constant 6.400000e+01 : f32
    %56 = vector.broadcast %cst_29 : f32 to vector<16x1xf32>
    %57 = arith.divf %55, %56 : vector<16x1xf32>
    %cst_30 = arith.constant 9.99999997E-7 : f32
    %58 = vector.broadcast %cst_30 : f32 to vector<16x1xf32>
    %59 = arith.addf %57, %58 : vector<16x1xf32>
    %60 = math.rsqrt %59 : vector<16x1xf32>
    %61 = vector.broadcast %60 : vector<16x1xf32> to vector<16x64xf32>
    %62 = arith.mulf %52, %61 : vector<16x64xf32>
    %63 = vector.broadcast %45 : vector<1x64xf32> to vector<16x64xf32>
    %64 = arith.mulf %62, %63 : vector<16x64xf32>
    %65 = vector.broadcast %46 : vector<1x64xf32> to vector<16x64xf32>
    %66 = arith.addf %64, %65 : vector<16x64xf32>
    %67 = arith.truncf %66 : vector<16x64xf32> to vector<16x64xbf16>
    %c0_31 = arith.constant 0 : index
    %c0_32 = arith.constant 0 : index
    %68 = vector.load %arg11[%c0_31, %c0_32] : memref<64x32xbf16, #tpu.memory_space<vmem>>, vector<64x32xbf16>
    %cst_33 = arith.constant dense<0.000000e+00> : vector<16x32xf32>
    %69 = tpu.matmul %67, %68, %cst_33 {dimension_numbers = #tpu.dot_dimension_numbers<[1], [0], [0], [1], [0, 0, 1, 1], [], []>} : vector<16x64xbf16>, vector<64x32xbf16>, vector<16x32xf32> -> vector<16x32xf32>
    %c0_34 = arith.constant 0 : index
    %c0_35 = arith.constant 0 : index
    %70 = vector.load %arg12[%c0_34, %c0_35] : memref<1x32xf32, #tpu.memory_space<vmem>>, vector<1x32xf32>
    %71 = vector.broadcast %70 : vector<1x32xf32> to vector<16x32xf32>
    %72 = arith.addf %69, %71 : vector<16x32xf32>
    %73 = arith.addf %7, %72 : vector<16x32xf32>
    %c0_36 = arith.constant 0 : index
    %c0_37 = arith.constant 0 : index
    %74 = vector.load %arg13[%c0_36, %c0_37] : memref<16x32xf32, #tpu.memory_space<vmem>>, vector<16x32xf32>
    tpu.vector_store %arg13[%c0_36, %c0_37], %73 {strides = array<i32>} : memref<16x32xf32, #tpu.memory_space<vmem>>, vector<16x32xf32>,
    return
  }
  func.func @transform_0(%arg0: i32) -> (i32, i32) {
    %c0_i32 = arith.constant 0 : i32
    %c0_i32_0 = arith.constant 0 : i32
    return %arg0, %c0_i32 : i32, i32
  }
  func.func @transform_1(%arg0: i32) -> (i32, i32) {
    %c0_i32 = arith.constant 0 : i32
    %c0_i32_0 = arith.constant 0 : i32
    return %arg0, %c0_i32 : i32, i32
  }
  func.func @transform_2(%arg0: i32) -> (i32, i32) {
    %c0_i32 = arith.constant 0 : i32
    %c0_i32_0 = arith.constant 0 : i32
    %c0_i32_1 = arith.constant 0 : i32
    return %c0_i32, %c0_i32_0 : i32, i32
  }
  func.func @transform_3(%arg0: i32) -> (i32, i32) {
    %c0_i32 = arith.constant 0 : i32
    %c0_i32_0 = arith.constant 0 : i32
    %c0_i32_1 = arith.constant 0 : i32
    return %c0_i32, %c0_i32_0 : i32, i32
  }
  func.func @transform_4(%arg0: i32) -> (i32, i32) {
    %c0_i32 = arith.constant 0 : i32
    %c0_i32_0 = arith.constant 0 : i32
    %c0_i32_1 = arith.constant 0 : i32
    return %c0_i32, %c0_i32_0 : i32, i32
  }
  func.func @transform_5(%arg0: i32) -> (i32, i32) {
    %c0_i32 = arith.constant 0 : i32
    %c0_i32_0 = arith.constant 0 : i32
    %c0_i32_1 = arith.constant 0 : i32
    return %c0_i32, %c0_i32_0 : i32, i32
  }
  func.func @transform_6(%arg0: i32) -> (i32, i32) {
    %c0_i32 = arith.constant 0 : i32
    %c0_i32_0 = arith.constant 0 : i32
    %c0_i32_1 = arith.constant 0 : i32
    return %c0_i32, %c0_i32_0 : i32, i32
  }
  func.func @transform_7(%arg0: i32) -> (i32, i32) {
    %c0_i32 = arith.constant 0 : i32
    %c0_i32_0 = arith.constant 0 : i32
    %c0_i32_1 = arith.constant 0 : i32
    return %c0_i32, %c0_i32_0 : i32, i32
  }
  func.func @transform_8(%arg0: i32) -> (i32, i32) {
    %c0_i32 = arith.constant 0 : i32
    %c0_i32_0 = arith.constant 0 : i32
    %c0_i32_1 = arith.constant 0 : i32
    return %c0_i32, %c0_i32_0 : i32, i32
  }
  func.func @transform_9(%arg0: i32) -> (i32, i32) {
    %c0_i32 = arith.constant 0 : i32
    %c0_i32_0 = arith.constant 0 : i32
    %c0_i32_1 = arith.constant 0 : i32
    return %c0_i32, %c0_i32_0 : i32, i32
  }
  func.func @transform_10(%arg0: i32) -> (i32, i32) {
    %c0_i32 = arith.constant 0 : i32
    %c0_i32_0 = arith.constant 0 : i32
    %c0_i32_1 = arith.constant 0 : i32
    return %c0_i32, %c0_i32_0 : i32, i32
  }
  func.func @transform_11(%arg0: i32) -> (i32, i32) {
    %c0_i32 = arith.constant 0 : i32
    %c0_i32_0 = arith.constant 0 : i32
    %c0_i32_1 = arith.constant 0 : i32
    return %c0_i32, %c0_i32_0 : i32, i32
  }
  func.func @transform_12(%arg0: i32) -> (i32, i32) {
    %c0_i32 = arith.constant 0 : i32
    %c0_i32_0 = arith.constant 0 : i32
    return %arg0, %c0_i32 : i32, i32
  }
}

</mosaic_0001>

<bundles_post_ra>
// kernel: tpu_custom_call.1
= control target key start
LH: loop header
LB: loop body
LE: loop exit
PB: predicated region body
PF: predicated region fallthrough
CT: control target
= control target key end

     0   :  { %17 = vsyncpa [#allocation3], 0  ;;  %s696_s0 = inlined_call_operand.hbm [shape: bf16[16,32], index: 0, kind: input, shape index: {}]   ;;  %s697_s1 = inlined_call_operand.vmem [shape: f32[16,32], index: 1, kind: input, shape index: {}]   ;;  %s698_s2 = inlined_call_operand.vmem [shape: bf16[32,32], index: 2, kind: input, shape index: {}]   ;;  %s699_s3 = inlined_call_operand.vmem [shape: f32[1,32], index: 3, kind: input, shape index: {}]   ;;  %s700_s4 = inlined_call_operand.vmem [shape: f32[1,32], index: 4, kind: input, shape index: {}]   ;;  %s701_s5 = inlined_call_operand.vmem [shape: f32[1,32], index: 5, kind: input, shape index: {}]   ;;  %s702_s6 = inlined_call_operand.vmem [shape: bf16[32,128], index: 6, kind: input, shape index: {}]   ;;  %s703_s7 = inlined_call_operand.vmem [shape: f32[1,128], index: 7, kind: input, shape index: {}]   ;;  %s704_s8 = inlined_call_operand.vmem [shape: f32[1,64], index: 8, kind: input, shape index: {}]   ;;  %s705_s9 = inlined_call_operand.vmem [shape: f32[1,64], index: 9, kind: input, shape index: {}]   ;;  %s706_s10 = inlined_call_operand.vmem [shape: bf16[64,32], index: 10, kind: input, shape index: {}]   ;;  %s707_s11 = inlined_call_operand.vmem [shape: f32[1,32], index: 11, kind: input, shape index: {}]   ;;  %s708_s12 = inlined_call_operand.hbm [shape: f32[16,32], index: 12, kind: output, shape index: {}]  }
   0x1   :  { %18 = vsyncpa [#allocation4], 0  ;;  %s23_s23 = sshll.u32 %s696_s0, 4  ;;  %s539_s24 = smov [#allocation2]   ;;  %s24_s23 = int_to_ptr.hbm [resolvable:$true] %s23_s23 }
   0x2   :  { %s25_s25 = sshll.u32 %s539_s24, 4  ;;  %s540_s26 = smov 64   ;;  %s26_s25 = int_to_ptr.vmem [resolvable:$true] %s25_s25 }
   0x3   :  { %s541_s27 = smov 4  }
   0x4   :  { %31 = dma.hbm_to_vmem [thread:$0]  %s24_s23, 128, %s26_s25, [#allocation3], %s540_s26, %s540_s26, %s541_s27  }
   0x5   :  { %535 = dma.done.wait [#allocation3], 128  }
   0x6   :  { %536 = vsyncadd [#allocation3], 4294967168  ;;  %v445_v0 = vld [vmem:[%s698_s2 + $0x8] sm:$0xff]  ;;  %v444_v1 = vld [vmem:[%s698_s2] sm:$0xff]  ;;  %vm82_vm0 = vcmask 261120   ;;  %v542_v14 = vmov 32.0  }
   0x7   :  { %92 = vmatpush.bf16.msra.mxu0 %v445_v0  ;;  %v443_v2 = vld [vmem:[#allocation2] sm:$0xff]  ;;  %v101_v9 = vld [vmem:[%s697_s1 + $0x8] sm:$0xff]  ;;  %467 = vrcp.f32 %v542_v14  ;;  %vm263_vm14 = vcmask 523264   ;;  %s389_s17 = sshll.u32 %s708_s12, 4  ;;  %s390_s17 = int_to_ptr.hbm [resolvable:$true] %s389_s17 }
   0x8   :  { %v100_v3 = vld [vmem:[%s697_s1] sm:$0xff]  ;;  %v447_v31 = vld [vmem:[%s702_s6 + $0x8] sm:$0xff]  ;;  %s546_s1 = smov 8  }
   0x9   :  { %v460_v4 = vld [vmem:[%s699_s3] ss:$0 sm:$0xff]  ;;  %203 = vmatpush.bf16.msra.mxu1 %v447_v31 }
   0xa   :  { %v446_v33 = vld [vmem:[%s702_s6] sm:$0xff] }
   0xb   :  { %93 = vmatpush.bf16.msra.mxu0 %v444_v1  ;;  %v461_v52 = vld [vmem:[%s700_s4] ss:$0 sm:$0xff] }
   0xc   :  { %v462_v57 = vld [vmem:[%s701_s5] ss:$0 sm:$0xff] }
   0xd   :  { %v468_v15 = vpop.eup %467  ;;  %204 = vmatpush.bf16.msra.mxu1 %v446_v33  ;;  %v463_v62 = vld [vmem:[%s703_s7] ss:$0 sm:$0xff] }
   0xe   :  { %414 = vmatmul.msk.bf16.vlgmr.msra.gmra.mxu0 %vm82_vm0, %v443_v2  ;;  %v119_v16 = vmul.f32 32.0, %v468_v15  ;;  %vm123_vm1 = vweird.f32 %v468_v15 }
  0x10   :  { %v120_v17 = vsub.f32 1.0, %v119_v16 }
  0x12   :  { %v121_v18 = vmul.f32 %v468_v15, %v120_v17 }
  0x14   :  { %v122_v19 = vadd.f32 %v468_v15, %v121_v18 }
  0x16   :  { %v124_v20 = vsel %vm123_vm1, %v468_v15, %v122_v19 }
  0x8b   :  { %v95_v5 = vpop.f32.mrf.mxu0 }
  0x8c   :  { %v102_v6 = vadd.f32 %v100_v3, %v95_v5 }
  0x8e   :  { %v630_v7 = vadd.f32 %v460_v4, %v102_v6 }
  0x90   :  { %v112_v8 = vsel %vm82_vm0, %v630_v7, 0.0 }
  0x91   :  { %113 = vadd.xlane.f32.xlu0 %v112_v8 }
  0x93   :  { %v97_v10 = vpop.f32.mrf.mxu0 }
  0x94   :  { %v103_v11 = vadd.f32 %v101_v9, %v97_v10 }
  0x96   :  { %v637_v12 = vadd.f32 %v460_v4, %v103_v11 }
  0x98   :  { %v115_v13 = vsel %vm82_vm0, %v637_v12, 0.0 }
  0x99   :  { %116 = vadd.xlane.f32.xlu0 %v115_v13 }
 0x104   :  { %v114_v21 = vpop.xlane.xlu0 %113 }
 0x105   :  { %v125_v22 = vmul.f32 %v124_v20, %v114_v21 }
 0x107   :  { %v127_v23 = vsub.f32 %v630_v7, %v125_v22 }
 0x109   :  { %v129_v24 = vmul.f32 %v127_v23, %v127_v23 }
 0x10b   :  { %v131_v25 = vsel %vm82_vm0, %v129_v24, 0.0 }
 0x10c   :  { %132 = vadd.xlane.f32.xlu1 %v131_v25  ;;  %v117_v26 = vpop.xlane.xlu0 %116 }
 0x10d   :  { %v126_v27 = vmul.f32 %v124_v20, %v117_v26 }
 0x10f   :  { %v128_v28 = vsub.f32 %v637_v12, %v126_v27 }
 0x111   :  { %v130_v29 = vmul.f32 %v128_v28, %v128_v28 }
 0x113   :  { %v134_v30 = vsel %vm82_vm0, %v130_v29, 0.0 }
 0x114   :  { %135 = vadd.xlane.f32.xlu1 %v134_v30 }
 0x17f   :  { %v133_v32 = vpop.xlane.xlu1 %132 }
 0x180   :  { %v137_v34 = vmul.f32 %v133_v32, %v124_v20 }
 0x182   :  { %v139_v35 = vadd.f32 1e-05, %v137_v34 }
 0x184   :  { %469 = vrsqrt.f32 %v139_v35  ;;  %vm147_vm3 = vweird.f32 %v139_v35 }
 0x187   :  { %v136_v36 = vpop.xlane.xlu1 %135 }
 0x188   :  { %v138_v37 = vmul.f32 %v136_v36, %v124_v20 }
 0x18a   :  { %v470_v38 = vpop.eup %469  ;;  %v140_v39 = vadd.f32 1e-05, %v138_v37 }
 0x18b   :  { %v142_v40 = vmul.f32 %v470_v38, %v139_v35  ;;  %vm148_vm2 = vweird.f32 %v470_v38 }
 0x18c   :  { %471 = vrsqrt.f32 %v140_v39  ;;  %vm149_vm4 = vmor %vm147_vm3, %vm148_vm2  ;;  %vm157_vm6 = vweird.f32 %v140_v39 }
 0x18d   :  { %v143_v41 = vmul.f32 %v470_v38, %v142_v40 }
 0x18f   :  { %v144_v42 = vmul.f32 0.5, %v143_v41 }
 0x191   :  { %v145_v43 = vsub.f32 1.5, %v144_v42 }
 0x192   :  { %v472_v44 = vpop.eup %471 }
 0x193   :  { %v146_v45 = vmul.f32 %v470_v38, %v145_v43  ;;  %v152_v46 = vmul.f32 %v472_v44, %v140_v39  ;;  %vm158_vm5 = vweird.f32 %v472_v44  ;;  %v543_v39 = vmov 64.0  }
 0x194   :  { %vm159_vm7 = vmor %vm157_vm6, %vm158_vm5 }
 0x195   :  { %v153_v47 = vmul.f32 %v472_v44, %v152_v46  ;;  %v150_v48 = vsel %vm149_vm4, %v470_v38, %v146_v45 }
 0x196   :  { %v161_v51 = vmul.f32 %v150_v48, %v127_v23 }
 0x197   :  { %v154_v49 = vmul.f32 0.5, %v153_v47 }
 0x198   :  { %v166_v56 = vmul.f32 %v461_v52, %v161_v51 }
 0x199   :  { %v155_v50 = vsub.f32 1.5, %v154_v49 }
 0x19a   :  { %v171_v59 = vadd.f32 %v462_v57, %v166_v56  ;;  %v451_v56 = vld [vmem:[%s706_s10 + $0x18] sm:$0xff] }
 0x19b   :  { %v156_v53 = vmul.f32 %v472_v44, %v155_v50  ;;  %369 = vmatpush.bf16.msra.mxu2 %v451_v56 }
 0x19d   :  { %v160_v54 = vsel %vm159_vm7, %v472_v44, %v156_v53 }
 0x19e   :  { %v162_v55 = vmul.f32 %v160_v54, %v128_v28 }
 0x1a0   :  { %v167_v58 = vmul.f32 %v461_v52, %v162_v55 }
 0x1a2   :  { %v172_v60 = vadd.f32 %v462_v57, %v167_v58  ;;  %v450_v57 = vld [vmem:[%s706_s10 + $0x10] sm:$0xff]  ;;  %v449_v58 = vld [vmem:[%s706_s10 + $0x8] sm:$0xff] }
 0x1a3   :  { %370 = vmatpush.bf16.msra.mxu2 %v450_v57 }
 0x1a4   :  { %v173_v61 = vpack.c.bf16 %v172_v60, %v171_v59  ;;  %v448_v60 = vld [vmem:[%s706_s10] sm:$0xff] }
 0x1a6   :  { %423 = vmatmul.msk.bf16.vlgmr.msra.gmra.mxu1 %vm82_vm0, %v173_v61 }
 0x1a7   :  { %371 = vmatpush.bf16.msra.mxu2 %v449_v58 }
 0x1ab   :  { %372 = vmatpush.bf16.msra.mxu2 %v448_v60 }
 0x223   :  { %v206_v63 = vpop.f32.mrf.mxu1 }
 0x224   :  { %v207_v0 = vadd.f32 %v463_v62, %v206_v63 }
 0x226   :  { %253 = vrot.lane.b32.xlu2 %v207_v0, %s540_s26  ;;  %v424_v3 = vmul.f32 -1.442695, %v207_v0 }
 0x228   :  { %473 = vpow2.f32 %v424_v3 }
 0x22b   :  { %v208_v1 = vpop.f32.mrf.mxu1 }
 0x22c   :  { %v209_v2 = vadd.f32 %v463_v62, %v208_v1 }
 0x22e   :  { %255 = vrot.lane.b32.xlu2 %v209_v2, %s540_s26  ;;  %v425_v4 = vmul.f32 -1.442695, %v209_v2  ;;  %v474_v5 = vpop.eup %473 }
 0x22f   :  { %v217_v6 = vadd.f32 1.0, %v474_v5 }
 0x230   :  { %475 = vpow2.f32 %v425_v4 }
 0x231   :  { %477 = vrcp.f32 %v217_v6  ;;  %v230_v19 = vand.u32 2147483648, %v217_v6  ;;  %vm224_vm9 = vweird.f32 %v217_v6  ;;  %v228_v20 = vand.u32 2147483647, %v217_v6 }
 0x233   :  { %v231_v23 = vor.u32 1.1754944e-38, %v230_v19  ;;  %vm229_vm11 = vcmp.eq.f32.partialorder %v228_v20, 8.507059e+37 }
 0x236   :  { %v476_v8 = vpop.eup %475 }
 0x237   :  { %v218_v9 = vadd.f32 1.0, %v476_v8  ;;  %v478_v10 = vpop.eup %477 }
 0x238   :  { %v220_v11 = vmul.f32 %v478_v10, %v217_v6  ;;  %vm225_vm8 = vweird.f32 %v478_v10 }
 0x239   :  { %479 = vrcp.f32 %v218_v9  ;;  %vm226_vm10 = vmor %vm224_vm9, %vm225_vm8  ;;  %v245_v26 = vand.u32 2147483648, %v218_v9  ;;  %vm239_vm13 = vweird.f32 %v218_v9  ;;  %v243_v28 = vand.u32 2147483647, %v218_v9 }
 0x23a   :  { %v221_v13 = vsub.f32 1.0, %v220_v11  ;;  %481 = vrcp.f32 %v543_v39 }
 0x23b   :  { %v246_v32 = vor.u32 1.1754944e-38, %v245_v26  ;;  %vm244_vm1 = vcmp.eq.f32.partialorder %v243_v28, 8.507059e+37 }
 0x23c   :  { %v222_v15 = vmul.f32 %v478_v10, %v221_v13 }
 0x23e   :  { %v223_v17 = vadd.f32 %v478_v10, %v222_v15 }
 0x23f   :  { %v480_v14 = vpop.eup %479 }
 0x240   :  { %v235_v16 = vmul.f32 %v480_v14, %v218_v9  ;;  %v227_v21 = vsel %vm226_vm10, %v478_v10, %v223_v17  ;;  %vm240_vm12 = vweird.f32 %v480_v14  ;;  %v482_v40 = vpop.eup %481  ;;  %v464_v17 = vld [vmem:[%s704_s8] ss:$0 sm:$0xff]  ;;  %s544_s8 = smov [#allocation5]  }
 0x241   :  { %v232_v24 = vsel %vm229_vm11, %v231_v23, %v227_v21  ;;  %vm241_vm15 = vmor %vm239_vm13, %vm240_vm12  ;;  %v271_v41 = vmul.f32 64.0, %v482_v40  ;;  %vm275_vm2 = vweird.f32 %v482_v40  ;;  %s387_s16 = sshll.u32 %s544_s8, 4  ;;  %s388_s16 = int_to_ptr.vmem [resolvable:$true] %s387_s16 }
 0x242   :  { %v236_v18 = vsub.f32 1.0, %v235_v16  ;;  %v249_v27 = vmul.f32 %v232_v24, %v207_v0 }
 0x243   :  { %v272_v42 = vsub.f32 1.0, %v271_v41 }
 0x244   :  { %v237_v22 = vmul.f32 %v480_v14, %v236_v18 }
 0x245   :  { %v273_v43 = vmul.f32 %v482_v40, %v272_v42 }
 0x246   :  { %v238_v25 = vadd.f32 %v480_v14, %v237_v22  ;;  %v465_v22 = vld [vmem:[%s705_s9] ss:$0 sm:$0xff] }
 0x247   :  { %v274_v44 = vadd.f32 %v482_v40, %v273_v43 }
 0x248   :  { %v242_v31 = vsel %vm241_vm15, %v480_v14, %v238_v25 }
 0x249   :  { %v247_v34 = vsel %vm244_vm1, %v246_v32, %v242_v31  ;;  %v276_v45 = vsel %vm275_vm2, %v482_v40, %v274_v44 }
 0x24a   :  { %v250_v35 = vmul.f32 %v247_v34, %v209_v2 }
 0x280   :  { %v254_v29 = vpop.permute.xlu2 %253 }
 0x281   :  { %v259_v30 = vmul.f32 %v254_v29, %v249_v27  ;;  %v466_v27 = vld [vmem:[%s707_s11] ss:$0 sm:$0xff]  ;;  %s545_s11 = smov 128  }
 0x283   :  { %v264_v33 = vsel %vm263_vm14, %v259_v30, 0.0 }
 0x284   :  { %265 = vadd.xlane.f32.xlu0 %v264_v33 }
 0x288   :  { %v256_v36 = vpop.permute.xlu2 %255 }
 0x289   :  { %v260_v37 = vmul.f32 %v256_v36, %v250_v35 }
 0x28b   :  { %v267_v38 = vsel %vm263_vm14, %v260_v37, 0.0 }
 0x28c   :  { %268 = vadd.xlane.f32.xlu1 %v267_v38 }
 0x2f7   :  { %v266_v46 = vpop.xlane.xlu0 %265 }
 0x2f8   :  { %v277_v47 = vmul.f32 %v276_v45, %v266_v46 }
 0x2fa   :  { %v279_v48 = vsub.f32 %v259_v30, %v277_v47 }
 0x2fc   :  { %v281_v49 = vmul.f32 %v279_v48, %v279_v48 }
 0x2fe   :  { %v283_v50 = vsel %vm263_vm14, %v281_v49, 0.0 }
 0x2ff   :  { %v269_v51 = vpop.xlane.xlu1 %268  ;;  %284 = vadd.xlane.f32.xlu2 %v283_v50 }
 0x300   :  { %v278_v52 = vmul.f32 %v276_v45, %v269_v51 }
 0x302   :  { %v280_v53 = vsub.f32 %v260_v37, %v278_v52 }
 0x304   :  { %v282_v54 = vmul.f32 %v280_v53, %v280_v53 }
 0x306   :  { %v286_v55 = vsel %vm263_vm14, %v282_v54, 0.0 }
 0x307   :  { %287 = vadd.xlane.f32.xlu0 %v286_v55 }
 0x372   :  { %v285_v59 = vpop.xlane.xlu2 %284 }
 0x373   :  { %v289_v61 = vmul.f32 %v285_v59, %v276_v45 }
 0x375   :  { %v291_v62 = vadd.f32 1e-06, %v289_v61 }
 0x377   :  { %483 = vrsqrt.f32 %v291_v62  ;;  %vm299_vm4 = vweird.f32 %v291_v62 }
 0x37a   :  { %v288_v63 = vpop.xlane.xlu0 %287 }
 0x37b   :  { %v290_v0 = vmul.f32 %v288_v63, %v276_v45 }
 0x37d   :  { %v484_v1 = vpop.eup %483  ;;  %v292_v2 = vadd.f32 1e-06, %v290_v0 }
 0x37e   :  { %v294_v3 = vmul.f32 %v484_v1, %v291_v62  ;;  %vm300_vm3 = vweird.f32 %v484_v1 }
 0x37f   :  { %485 = vrsqrt.f32 %v292_v2  ;;  %vm301_vm5 = vmor %vm299_vm4, %vm300_vm3  ;;  %vm309_vm7 = vweird.f32 %v292_v2 }
 0x380   :  { %v295_v4 = vmul.f32 %v484_v1, %v294_v3 }
 0x382   :  { %v296_v5 = vmul.f32 0.5, %v295_v4 }
 0x384   :  { %v297_v6 = vsub.f32 1.5, %v296_v5 }
 0x385   :  { %v486_v8 = vpop.eup %485 }
 0x386   :  { %v298_v9 = vmul.f32 %v484_v1, %v297_v6  ;;  %v304_v10 = vmul.f32 %v486_v8, %v292_v2  ;;  %vm310_vm6 = vweird.f32 %v486_v8 }
 0x387   :  { %vm311_vm8 = vmor %vm309_vm7, %vm310_vm6 }
 0x388   :  { %v305_v11 = vmul.f32 %v486_v8, %v304_v10  ;;  %v302_v13 = vsel %vm301_vm5, %v484_v1, %v298_v9 }
 0x389   :  { %v313_v16 = vmul.f32 %v302_v13, %v279_v48 }
 0x38a   :  { %v306_v14 = vmul.f32 0.5, %v305_v11 }
 0x38b   :  { %v318_v21 = vmul.f32 %v464_v17, %v313_v16 }
 0x38c   :  { %v307_v15 = vsub.f32 1.5, %v306_v14 }
 0x38d   :  { %v323_v24 = vadd.f32 %v465_v22, %v318_v21 }
 0x38e   :  { %v308_v18 = vmul.f32 %v486_v8, %v307_v15 }
 0x390   :  { %v312_v19 = vsel %vm311_vm8, %v486_v8, %v308_v18 }
 0x391   :  { %v314_v20 = vmul.f32 %v312_v19, %v280_v53 }
 0x393   :  { %v319_v23 = vmul.f32 %v464_v17, %v314_v20 }
 0x395   :  { %v324_v25 = vadd.f32 %v465_v22, %v319_v23 }
 0x397   :  { %v325_v26 = vpack.c.bf16 %v324_v25, %v323_v24 }
 0x399   :  { %442 = vmatmul.msk.bf16.vlgmr.msra.gmra.mxu2 %vm263_vm14, %v325_v26 }
 0x41c   :  { %v374_v28 = vpop.f32.mrf.mxu2 }
 0x41d   :  { %v375_v29 = vadd.f32 %v466_v27, %v374_v28 }
 0x41f   :  { %v379_v30 = vadd.f32 %v375_v29, %v630_v7 }
 0x421   :  { %381 = vst.msk [vmem:[#allocation5] sm:$0xff] %vm82_vm0, %v379_v30 }
 0x424   :  { %v376_v31 = vpop.f32.mrf.mxu2 }
 0x425   :  { %v377_v32 = vadd.f32 %v466_v27, %v376_v31 }
 0x427   :  { %v380_v33 = vadd.f32 %v377_v32, %v637_v12 }
 0x429   :  { %382 = vst.msk [vmem:[#allocation5 + $0x8] sm:$0xff] %vm82_vm0, %v380_v33 }
 0x42a   :  { %395 = dma.vmem_to_hbm [thread:$0]  %s388_s16, 256, %s390_s17, [#allocation4], %s545_s11, %s545_s11, %s546_s1  }
 0x42b   :  { %537 = dma.done.wait [#allocation4], 256  }
 0x42c   :  { %538 = vsyncadd [#allocation4], 4294967040 }
 0x42d   :  { %400 = vsyncpa [#allocation3], 1 }
 0x42e   :  { %401 = vsyncpa [#allocation4], 1 }

</bundles_post_ra>
